<compile_context>
chip_gen: v6e
topology: v6e:2x2x1
jax: 0.10.0
libtpu: 0.0.40
codegen_flags: <defaults>
</compile_context>

<pallas_src>
import functools

import jax
import jax.numpy as jnp
from jax.experimental import pallas as pl
from jax.experimental.pallas import tpu as pltpu

LEAKY_SLOPE = 0.01      # torch.nn.LeakyReLU default negative_slope
NEG_BIG = -1e30         # finite "minus infinity" for padded atom lanes
N_ATOMS_PAD = 128       # lane-dense padded atom axis


def c51_kernel(x_ref, w1_ref, b1_ref, w2_ref, b2_ref, w3_ref, b3_ref, o_ref,
               *, action_dim, n_atoms_pad):
    # Feature extractor: Linear -> LeakyReLU -> Linear -> LeakyReLU
    x = x_ref[...]                                                  # (B, D)
    h = jnp.dot(x, w1_ref[...], preferred_element_type=jnp.float32) + b1_ref[...]
    h = jnp.where(h >= 0, h, LEAKY_SLOPE * h)                       # (B, H)
    h = jnp.dot(h, w2_ref[...], preferred_element_type=jnp.float32) + b2_ref[...]
    h = jnp.where(h >= 0, h, LEAKY_SLOPE * h)                       # (B, H)

    # Single fused head matmul: (B, H) @ (H, A*128) -> (B, A*128).
    # Padded lanes get logit = 0 @ h + (-1e30) = -1e30  ->  exp underflows to 0.
    logits = jnp.dot(h, w3_ref[...], preferred_element_type=jnp.float32) + b3_ref[...]

    # Per-action softmax over 128-aligned lane blocks (static unroll, A small).
    for a in range(action_dim):
        lo = a * n_atoms_pad
        hi = lo + n_atoms_pad
        la = logits[:, lo:hi]                                       # (B, 128)
        m = jnp.max(la, axis=-1, keepdims=True)
        e = jnp.exp(la - m)
        s = jnp.sum(e, axis=-1, keepdims=True)
        inv = pl.reciprocal(s, approx=True)                         # EUP slot
        inv = inv * (2.0 - s * inv)                                 # 1 NR step -> ~exact
        o_ref[:, lo:hi] = e * inv                                   # dense 128-lane store


def init_params(key, input_dim, action_dim, hidden_size, n_atoms):
    """Matches C51Network._init_weights: weights ~ N(0, 0.1), biases = 0.
    Stored in the PyTorch (out_features, in_features) convention."""
    k1, k2, k3 = jax.random.split(key, 3)
    return dict(
        w1=0.1 * jax.random.normal(k1, (hidden_size, input_dim), jnp.float32),
        b1=jnp.zeros((hidden_size,), jnp.float32),
        w2=0.1 * jax.random.normal(k2, (hidden_size, hidden_size), jnp.float32),
        b2=jnp.zeros((hidden_size,), jnp.float32),
        w3=0.1 * jax.random.normal(k3, (action_dim * n_atoms, hidden_size), jnp.float32),
        b3=jnp.zeros((action_dim * n_atoms,), jnp.float32),
    )


def prepare_params(params, action_dim, n_atoms, n_atoms_pad=N_ATOMS_PAD):
    """One-time re-layout of PyTorch-convention params into kernel layout.

    Call once after init / after each optimizer step, NOT per forward."""
    hidden = params["w1"].shape[0]
    w1t = jnp.asarray(params["w1"]).T                               # (D, H)
    b1 = jnp.asarray(params["b1"]).reshape(1, hidden)               # (1, H)
    w2t = jnp.asarray(params["w2"]).T                               # (H, H)
    b2 = jnp.asarray(params["b2"]).reshape(1, hidden)               # (1, H)

    # (A*N, H) -> (A, N, H) -> zero-pad N to 128 -> (H, A, 128) -> (H, A*128)
    w3 = jnp.asarray(params["w3"]).reshape(action_dim, n_atoms, hidden)
    w3 = jnp.pad(w3, ((0, 0), (0, n_atoms_pad - n_atoms), (0, 0)))
    w3t = w3.transpose(2, 0, 1).reshape(hidden, action_dim * n_atoms_pad)

    # (A*N,) -> (A, N) -> pad with NEG_BIG -> (1, A*128)
    b3 = jnp.asarray(params["b3"]).reshape(action_dim, n_atoms)
    b3 = jnp.pad(b3, ((0, 0), (0, n_atoms_pad - n_atoms)), constant_values=NEG_BIG)
    b3 = b3.reshape(1, action_dim * n_atoms_pad)

    return dict(w1t=w1t, b1=b1, w2t=w2t, b2=b2, w3t=w3t, b3=b3)


@functools.partial(jax.jit, static_argnames=("action_dim", "n_atoms", "n_atoms_pad"))
def c51_forward(state, prepped, action_dim, n_atoms, n_atoms_pad=N_ATOMS_PAD):
    """Pallas implementation of C51Network.forward -> probs [B, A, n_atoms]."""
    batch = state.shape[0]
    kernel = functools.partial(c51_kernel, action_dim=action_dim,
                               n_atoms_pad=n_atoms_pad)
    vmem = pl.BlockSpec(memory_space=pltpu.MemorySpace.VMEM)

    out_flat = pl.pallas_call(
        kernel,
        out_shape=jax.ShapeDtypeStruct((batch, action_dim * n_atoms_pad), jnp.float32),
        in_specs=[vmem] * 7,
        out_specs=vmem,
    )(state, prepped["w1t"], prepped["b1"], prepped["w2t"], prepped["b2"],
      prepped["w3t"], prepped["b3"])

    # Free reshape + slice back to PyTorch layout [B, A, n_atoms].
    return out_flat.reshape(batch, action_dim, n_atoms_pad)[:, :, :n_atoms]


def reference_forward(state, params, action_dim, n_atoms):
    """Pure-JAX reference matching the PyTorch forward exactly."""
    h = state @ params["w1"].T + params["b1"]
    h = jnp.where(h >= 0, h, LEAKY_SLOPE * h)
    h = h @ params["w2"].T + params["b2"]
    h = jnp.where(h >= 0, h, LEAKY_SLOPE * h)
    logits = h @ params["w3"].T + params["b3"]
    logits = logits.reshape(state.shape[0], action_dim, n_atoms)
    return jax.nn.softmax(logits, axis=2)


if __name__ == "__main__":
    input_dim = 16
    action_dim = 4
    hidden_size = 64       # module default
    n_atoms = 51
    batch = 8              # multiple of 8 -> full sublane occupancy

    key = jax.random.PRNGKey(0)
    pkey, xkey = jax.random.split(key)
    params = init_params(pkey, input_dim, action_dim, hidden_size, n_atoms)
    state = jax.random.normal(xkey, (batch, input_dim), jnp.float32)

    # One-time weight re-layout (hoisted out of the per-call path).
    prepped = jax.tree_util.tree_map(jax.block_until_ready,
                                     prepare_params(params, action_dim, n_atoms))

    probs = c51_forward(state, prepped, action_dim, n_atoms)
    probs = jax.block_until_ready(probs)

    ref = reference_forward(state, params, action_dim, n_atoms)
    assert probs.shape == (batch, action_dim, n_atoms)
    assert jnp.allclose(jnp.sum(probs, axis=-1), 1.0, atol=1e-5)
    assert jnp.allclose(probs, ref, atol=1e-5, rtol=1e-4)

    print("KERNEL_OK")
</pallas_src>

<mosaic_0001>
module attributes {stable_mosaic.version = 11 : i64} {
  func.func @c51_kernel(%arg0: memref<8x16xf32, #tpu.memory_space<vmem>>, %arg1: memref<16x64xf32, #tpu.memory_space<vmem>>, %arg2: memref<1x64xf32, #tpu.memory_space<vmem>>, %arg3: memref<64x64xf32, #tpu.memory_space<vmem>>, %arg4: memref<1x64xf32, #tpu.memory_space<vmem>>, %arg5: memref<64x512xf32, #tpu.memory_space<vmem>>, %arg6: memref<1x512xf32, #tpu.memory_space<vmem>>, %arg7: memref<8x512xf32, #tpu.memory_space<vmem>>) attributes {dimension_semantics = [], scalar_prefetch = 0 : i64, scratch_operands = 0 : i64, tpu.core_type = #tpu.core_type<tc>} {
    %c0 = arith.constant 0 : index
    %c0_0 = arith.constant 0 : index
    %0 = vector.load %arg0[%c0, %c0_0] : memref<8x16xf32, #tpu.memory_space<vmem>>, vector<8x16xf32>
    %c0_1 = arith.constant 0 : index
    %c0_2 = arith.constant 0 : index
    %1 = vector.load %arg1[%c0_1, %c0_2] : memref<16x64xf32, #tpu.memory_space<vmem>>, vector<16x64xf32>
    %cst = arith.constant dense<0.000000e+00> : vector<8x64xf32>
    %2 = tpu.matmul %0, %1, %cst {dimension_numbers = #tpu.dot_dimension_numbers<[1], [0], [0], [1], [0, 0, 1, 1], [], []>} : vector<8x16xf32>, vector<16x64xf32>, vector<8x64xf32> -> vector<8x64xf32>
    %c0_3 = arith.constant 0 : index
    %c0_4 = arith.constant 0 : index
    %3 = vector.load %arg2[%c0_3, %c0_4] : memref<1x64xf32, #tpu.memory_space<vmem>>, vector<1x64xf32>
    %4 = vector.broadcast %3 : vector<1x64xf32> to vector<8x64xf32>
    %5 = arith.addf %2, %4 : vector<8x64xf32>
    %cst_5 = arith.constant 0.000000e+00 : f32
    %6 = vector.broadcast %cst_5 : f32 to vector<8x64xf32>
    %7 = arith.cmpf oge, %5, %6 : vector<8x64xf32>
    %cst_6 = arith.constant 0.00999999977 : f32
    %8 = vector.broadcast %cst_6 : f32 to vector<8x64xf32>
    %9 = arith.mulf %8, %5 : vector<8x64xf32>
    %10 = arith.select %7, %5, %9 : vector<8x64xi1>, vector<8x64xf32>
    %c0_7 = arith.constant 0 : index
    %c0_8 = arith.constant 0 : index
    %11 = vector.load %arg3[%c0_7, %c0_8] : memref<64x64xf32, #tpu.memory_space<vmem>>, vector<64x64xf32>
    %cst_9 = arith.constant dense<0.000000e+00> : vector<8x64xf32>
    %12 = tpu.matmul %10, %11, %cst_9 {dimension_numbers = #tpu.dot_dimension_numbers<[1], [0], [0], [1], [0, 0, 1, 1], [], []>} : vector<8x64xf32>, vector<64x64xf32>, vector<8x64xf32> -> vector<8x64xf32>
    %c0_10 = arith.constant 0 : index
    %c0_11 = arith.constant 0 : index
    %13 = vector.load %arg4[%c0_10, %c0_11] : memref<1x64xf32, #tpu.memory_space<vmem>>, vector<1x64xf32>
    %14 = vector.broadcast %13 : vector<1x64xf32> to vector<8x64xf32>
    %15 = arith.addf %12, %14 : vector<8x64xf32>
    %cst_12 = arith.constant 0.000000e+00 : f32
    %16 = vector.broadcast %cst_12 : f32 to vector<8x64xf32>
    %17 = arith.cmpf oge, %15, %16 : vector<8x64xf32>
    %cst_13 = arith.constant 0.00999999977 : f32
    %18 = vector.broadcast %cst_13 : f32 to vector<8x64xf32>
    %19 = arith.mulf %18, %15 : vector<8x64xf32>
    %20 = arith.select %17, %15, %19 : vector<8x64xi1>, vector<8x64xf32>
    %c0_14 = arith.constant 0 : index
    %c0_15 = arith.constant 0 : index
    %21 = vector.load %arg5[%c0_14, %c0_15] : memref<64x512xf32, #tpu.memory_space<vmem>>, vector<64x512xf32>
    %cst_16 = arith.constant dense<0.000000e+00> : vector<8x512xf32>
    %22 = tpu.matmul %20, %21, %cst_16 {dimension_numbers = #tpu.dot_dimension_numbers<[1], [0], [0], [1], [0, 0, 1, 1], [], []>} : vector<8x64xf32>, vector<64x512xf32>, vector<8x512xf32> -> vector<8x512xf32>
    %c0_17 = arith.constant 0 : index
    %c0_18 = arith.constant 0 : index
    %23 = vector.load %arg6[%c0_17, %c0_18] : memref<1x512xf32, #tpu.memory_space<vmem>>, vector<1x512xf32>
    %24 = vector.broadcast %23 : vector<1x512xf32> to vector<8x512xf32>
    %25 = arith.addf %22, %24 : vector<8x512xf32>
    %26 = vector.extract_strided_slice %25 {offsets = [0, 0], sizes = [8, 128], strides = [1, 1]} : vector<8x512xf32> to vector<8x128xf32>
    %cst_19 = arith.constant dense<0xFF800000> : vector<8xf32>
    %27 = vector.multi_reduction <maximumf>, %26, %cst_19 [1] : vector<8x128xf32> to vector<8xf32>
    %28 = vector.shape_cast %27 : vector<8xf32> to vector<8x1xf32>
    %29 = vector.broadcast %28 : vector<8x1xf32> to vector<8x128xf32>
    %30 = arith.subf %26, %29 : vector<8x128xf32>
    %31 = math.exp %30 : vector<8x128xf32>
    %cst_20 = arith.constant dense<0.000000e+00> : vector<8xf32>
    %32 = vector.multi_reduction <add>, %31, %cst_20 [1] : vector<8x128xf32> to vector<8xf32>
    %33 = vector.shape_cast %32 : vector<8xf32> to vector<8x1xf32>
    %34 = tpu.reciprocal %33 {approx = true} : vector<8x1xf32> -> vector<8x1xf32>
    %35 = arith.mulf %33, %34 : vector<8x1xf32>
    %cst_21 = arith.constant 2.000000e+00 : f32
    %36 = vector.broadcast %cst_21 : f32 to vector<8x1xf32>
    %37 = arith.subf %36, %35 : vector<8x1xf32>
    %38 = arith.mulf %34, %37 : vector<8x1xf32>
    %39 = vector.broadcast %38 : vector<8x1xf32> to vector<8x128xf32>
    %40 = arith.mulf %31, %39 : vector<8x128xf32>
    %c0_22 = arith.constant 0 : index
    %c0_23 = arith.constant 0 : index
    %41 = vector.load %arg7[%c0_22, %c0_23] : memref<8x512xf32, #tpu.memory_space<vmem>>, vector<8x128xf32>
    tpu.vector_store %arg7[%c0_22, %c0_23], %40 {strides = array<i32>} : memref<8x512xf32, #tpu.memory_space<vmem>>, vector<8x128xf32>,
    %42 = vector.extract_strided_slice %25 {offsets = [0, 128], sizes = [8, 128], strides = [1, 1]} : vector<8x512xf32> to vector<8x128xf32>
    %cst_24 = arith.constant dense<0xFF800000> : vector<8xf32>
    %43 = vector.multi_reduction <maximumf>, %42, %cst_24 [1] : vector<8x128xf32> to vector<8xf32>
    %44 = vector.shape_cast %43 : vector<8xf32> to vector<8x1xf32>
    %45 = vector.broadcast %44 : vector<8x1xf32> to vector<8x128xf32>
    %46 = arith.subf %42, %45 : vector<8x128xf32>
    %47 = math.exp %46 : vector<8x128xf32>
    %cst_25 = arith.constant dense<0.000000e+00> : vector<8xf32>
    %48 = vector.multi_reduction <add>, %47, %cst_25 [1] : vector<8x128xf32> to vector<8xf32>
    %49 = vector.shape_cast %48 : vector<8xf32> to vector<8x1xf32>
    %50 = tpu.reciprocal %49 {approx = true} : vector<8x1xf32> -> vector<8x1xf32>
    %51 = arith.mulf %49, %50 : vector<8x1xf32>
    %cst_26 = arith.constant 2.000000e+00 : f32
    %52 = vector.broadcast %cst_26 : f32 to vector<8x1xf32>
    %53 = arith.subf %52, %51 : vector<8x1xf32>
    %54 = arith.mulf %50, %53 : vector<8x1xf32>
    %55 = vector.broadcast %54 : vector<8x1xf32> to vector<8x128xf32>
    %56 = arith.mulf %47, %55 : vector<8x128xf32>
    %c0_27 = arith.constant 0 : index
    %c128 = arith.constant 128 : index
    %57 = vector.load %arg7[%c0_27, %c128] : memref<8x512xf32, #tpu.memory_space<vmem>>, vector<8x128xf32>
    tpu.vector_store %arg7[%c0_27, %c128], %56 {strides = array<i32>} : memref<8x512xf32, #tpu.memory_space<vmem>>, vector<8x128xf32>,
    %58 = vector.extract_strided_slice %25 {offsets = [0, 256], sizes = [8, 128], strides = [1, 1]} : vector<8x512xf32> to vector<8x128xf32>
    %cst_28 = arith.constant dense<0xFF800000> : vector<8xf32>
    %59 = vector.multi_reduction <maximumf>, %58, %cst_28 [1] : vector<8x128xf32> to vector<8xf32>
    %60 = vector.shape_cast %59 : vector<8xf32> to vector<8x1xf32>
    %61 = vector.broadcast %60 : vector<8x1xf32> to vector<8x128xf32>
    %62 = arith.subf %58, %61 : vector<8x128xf32>
    %63 = math.exp %62 : vector<8x128xf32>
    %cst_29 = arith.constant dense<0.000000e+00> : vector<8xf32>
    %64 = vector.multi_reduction <add>, %63, %cst_29 [1] : vector<8x128xf32> to vector<8xf32>
    %65 = vector.shape_cast %64 : vector<8xf32> to vector<8x1xf32>
    %66 = tpu.reciprocal %65 {approx = true} : vector<8x1xf32> -> vector<8x1xf32>
    %67 = arith.mulf %65, %66 : vector<8x1xf32>
    %cst_30 = arith.constant 2.000000e+00 : f32
    %68 = vector.broadcast %cst_30 : f32 to vector<8x1xf32>
    %69 = arith.subf %68, %67 : vector<8x1xf32>
    %70 = arith.mulf %66, %69 : vector<8x1xf32>
    %71 = vector.broadcast %70 : vector<8x1xf32> to vector<8x128xf32>
    %72 = arith.mulf %63, %71 : vector<8x128xf32>
    %c0_31 = arith.constant 0 : index
    %c256 = arith.constant 256 : index
    %73 = vector.load %arg7[%c0_31, %c256] : memref<8x512xf32, #tpu.memory_space<vmem>>, vector<8x128xf32>
    tpu.vector_store %arg7[%c0_31, %c256], %72 {strides = array<i32>} : memref<8x512xf32, #tpu.memory_space<vmem>>, vector<8x128xf32>,
    %74 = vector.extract_strided_slice %25 {offsets = [0, 384], sizes = [8, 128], strides = [1, 1]} : vector<8x512xf32> to vector<8x128xf32>
    %cst_32 = arith.constant dense<0xFF800000> : vector<8xf32>
    %75 = vector.multi_reduction <maximumf>, %74, %cst_32 [1] : vector<8x128xf32> to vector<8xf32>
    %76 = vector.shape_cast %75 : vector<8xf32> to vector<8x1xf32>
    %77 = vector.broadcast %76 : vector<8x1xf32> to vector<8x128xf32>
    %78 = arith.subf %74, %77 : vector<8x128xf32>
    %79 = math.exp %78 : vector<8x128xf32>
    %cst_33 = arith.constant dense<0.000000e+00> : vector<8xf32>
    %80 = vector.multi_reduction <add>, %79, %cst_33 [1] : vector<8x128xf32> to vector<8xf32>
    %81 = vector.shape_cast %80 : vector<8xf32> to vector<8x1xf32>
    %82 = tpu.reciprocal %81 {approx = true} : vector<8x1xf32> -> vector<8x1xf32>
    %83 = arith.mulf %81, %82 : vector<8x1xf32>
    %cst_34 = arith.constant 2.000000e+00 : f32
    %84 = vector.broadcast %cst_34 : f32 to vector<8x1xf32>
    %85 = arith.subf %84, %83 : vector<8x1xf32>
    %86 = arith.mulf %82, %85 : vector<8x1xf32>
    %87 = vector.broadcast %86 : vector<8x1xf32> to vector<8x128xf32>
    %88 = arith.mulf %79, %87 : vector<8x128xf32>
    %c0_35 = arith.constant 0 : index
    %c384 = arith.constant 384 : index
    %89 = vector.load %arg7[%c0_35, %c384] : memref<8x512xf32, #tpu.memory_space<vmem>>, vector<8x128xf32>
    tpu.vector_store %arg7[%c0_35, %c384], %88 {strides = array<i32>} : memref<8x512xf32, #tpu.memory_space<vmem>>, vector<8x128xf32>,
    return
  }
}

</mosaic_0001>

<bundles_post_ra>
// kernel: c51_forward.1
= control target key start
LH: loop header
LB: loop body
LE: loop exit
PB: predicated region body
PF: predicated region fallthrough
CT: control target
= control target key end

     0   :  { %12 = vsyncpa [#allocation3], 0  ;;  %s811_s0 = inlined_call_operand.hbm [shape: f32[8,16], index: 0, kind: input, shape index: {}]   ;;  %s812_s1 = inlined_call_operand.hbm [shape: f32[16,64], index: 1, kind: input, shape index: {}]   ;;  %s813_s2 = inlined_call_operand.vmem [shape: f32[1,64], index: 2, kind: input, shape index: {}]   ;;  %s814_s3 = inlined_call_operand.hbm [shape: f32[64,64], index: 3, kind: input, shape index: {}]   ;;  %s815_s4 = inlined_call_operand.hbm [shape: f32[1,64], index: 4, kind: input, shape index: {}]   ;;  %s816_s5 = inlined_call_operand.hbm [shape: f32[64,512], index: 5, kind: input, shape index: {}]   ;;  %s817_s6 = inlined_call_operand.vmem [shape: f32[1,512], index: 6, kind: input, shape index: {}]   ;;  %s818_s7 = inlined_call_operand.vmem [shape: f32[8,512], index: 7, kind: output, shape index: {}]  }
   0x1   :  { %13 = vsyncpa [#allocation5], 0 }
   0x2   :  { %14 = vsyncpa [#allocation8], 0  ;;  %s704_s24 = smov [#allocation4]  }
   0x3   :  { %s30_s25 = sshll.u32 %s704_s24, 4  ;;  %s31_s25 = int_to_ptr.vmem [resolvable:$true] %s30_s25 }
   0x4   :  { %s606_s26 = scalar_lea.vmem %s31_s25, 256  ;;  %p611_p1 = scmp.lt.s32.totalorder %s31_s25, %s31_s25 }
   0x5   :  { %p607_p0 = scmp.ne.s32.totalorder %s31_s25, %s606_s26  ;;  %p612_p2 = scmp.lt.s32.totalorder %s606_s26, %s606_s26 }
   0x7   :  { %p613_p3 = por %p612_p2, %p611_p1 }
   0x9   :  { %p614_p4 = pnand %p613_p3, %p607_p0 }
   0xb   :  { %617 = shalt.err (!%p614_p4)
}
   0xc   :  { %s705_s27 = smov 128   ;;  %s706_s28 = smov 8  }
   0xd   :  { %36 = dma.hbm_to_vmem [thread:$0]  %s812_s1, 256, %s31_s25, [#allocation5], %s705_s27, %s705_s27, %s706_s28  }
   0xe   :  { %s707_s8 = smov [#allocation7]   ;;  %s708_s10 = smov [#allocation2]  }
   0xf   :  { %s57_s9 = sshll.u32 %s707_s8, 4  ;;  %s21_s11 = sshll.u32 %s708_s10, 4  ;;  %s58_s9 = int_to_ptr.vmem [resolvable:$true] %s57_s9  ;;  %s22_s11 = int_to_ptr.vmem [resolvable:$true] %s21_s11 }
  0x10   :  { %s626_s12 = scalar_lea.vmem %s58_s9, 16  ;;  %s630_s13 = scalar_lea.vmem %s58_s9, 32 }
  0x11   :  { %p627_p5 = scmp.ne.s32.totalorder %s58_s9, %s626_s12  ;;  %p631_p6 = scmp.lt.s32.totalorder %s58_s9, %s58_s9 }
  0x12   :  { %p632_p7 = scmp.lt.s32.totalorder %s630_s13, %s626_s12 }
  0x14   :  { %p633_p8 = por %p632_p7, %p631_p6 }
  0x16   :  { %p634_p9 = pnand %p633_p8, %p627_p5 }
  0x18   :  { %637 = shalt.err (!%p634_p9)
}
  0x19   :  { %60 = dma.hbm_to_vmem [thread:$0]  %s815_s4, 16, %s58_s9, [#allocation8]  }
  0x1a   :  { %s646_s16 = scalar_lea.vmem %s22_s11, 128  ;;  %p651_p11 = scmp.lt.s32.totalorder %s22_s11, %s22_s11 }
  0x1b   :  { %p647_p10 = scmp.ne.s32.totalorder %s22_s11, %s646_s16  ;;  %p652_p12 = scmp.lt.s32.totalorder %s646_s16, %s646_s16 }
  0x1d   :  { %p653_p13 = por %p652_p12, %p651_p11 }
  0x1f   :  { %p654_p0 = pnand %p653_p13, %p647_p10 }
  0x21   :  { %657 = shalt.err (!%p654_p0)
}
  0x22   :  { %24 = dma.hbm_to_vmem [thread:$0]  %s811_s0, 128, %s22_s11, [#allocation3]  }
  0x23   :  { %s709_s18 = smov [#allocation6]   ;;  %s710_s20 = smov [#allocation9]  }
  0x24   :  { %s44_s19 = sshll.u32 %s709_s18, 4  ;;  %s66_s21 = sshll.u32 %s710_s20, 4  ;;  %s45_s19 = int_to_ptr.vmem [resolvable:$true] %s44_s19  ;;  %s67_s21 = int_to_ptr.vmem [resolvable:$true] %s66_s21 }
  0x25   :  { %s666_s22 = scalar_lea.vmem %s45_s19, 1024  ;;  %p671_p2 = scmp.lt.s32.totalorder %s45_s19, %s45_s19 }
  0x26   :  { %p667_p1 = scmp.ne.s32.totalorder %s45_s19, %s666_s22  ;;  %p672_p3 = scmp.lt.s32.totalorder %s666_s22, %s666_s22 }
  0x28   :  { %p673_p4 = por %p672_p3, %p671_p2 }
  0x2a   :  { %p674_p5 = pnand %p673_p4, %p667_p1 }
  0x2c   :  { %677 = shalt.err (!%p674_p5)
}
  0x2d   :  { %50 = dma.hbm_to_vmem [thread:$0]  %s814_s3, 1024, %s45_s19, [#allocation5], %s705_s27, %s705_s27, %s706_s28  }
  0x2e   :  { %s686_s0 = scalar_lea.vmem %s67_s21, 4096  ;;  %p691_p7 = scmp.lt.s32.totalorder %s67_s21, %s67_s21 }
  0x2f   :  { %p687_p6 = scmp.ne.s32.totalorder %s67_s21, %s686_s0  ;;  %p692_p8 = scmp.lt.s32.totalorder %s686_s0, %s686_s0 }
  0x31   :  { %p693_p9 = por %p692_p8, %p691_p7 }
  0x33   :  { %p694_p10 = pnand %p693_p9, %p687_p6 }
  0x35   :  { %697 = shalt.err (!%p694_p10)
}
  0x36   :  { %s711_s24 = smov 512   ;;  %s712_s25 = smov 32  }
  0x37   :  { %72 = dma.hbm_to_vmem [thread:$0]  %s816_s5, 4096, %s67_s21, [#allocation8], %s711_s24, %s711_s24, %s712_s25  }
  0x38   :  { %698 = dma.done.wait [#allocation3], 128  }
  0x39   :  { %699 = vsyncadd [#allocation3], 4294967168 }
  0x3a   :  { %700 = dma.done.wait [#allocation5], 1280  }
  0x3b   :  { %701 = vsyncadd [#allocation5], 4294966016 }
  0x3c   :  { %702 = dma.done.wait [#allocation8], 4112  }
  0x3d   :  { %703 = vsyncadd [#allocation8], 4294963184  ;;  %v713_v0 = vmov 0.0   ;;  %vm714_vm0 = vmmov 0   ;;  %v92_v1 = vld [vmem:[#allocation4 + $0x8] sm:$0xff]  ;;  %v91_v2 = vld [vmem:[#allocation4] sm:$0xff]  ;;  %v303_v56 = vlaneseq }
  0x3e   :  { %545 = vmatprep.subr.mxu0 %v713_v0  ;;  %549 = vmatprep.mubr.msk.f32.mxu0 %vm714_vm0, %v713_v0  ;;  %v90_v3 = vld [vmem:[#allocation2] sm:$0xff]  ;;  %vm100_vm1 = vcmask 130048   ;;  %v184_v4 = vld [vmem:[#allocation6 + $0x38] sm:$0xff]  ;;  %v183_v5 = vld [vmem:[#allocation6 + $0x30] sm:$0xff]  ;;  %vm192_vm3 = vcmask 523264  }
  0x3f   :  { %552 = vmatprep.subr.mxu1 %v713_v0  ;;  %568 = vmatprep.mubr.msk.f32.mxu1 %vm714_vm0, %v713_v0  ;;  %v182_v6 = vld [vmem:[#allocation6 + $0x28] sm:$0xff]  ;;  %v181_v7 = vld [vmem:[#allocation6 + $0x20] sm:$0xff]  ;;  %v180_v8 = vld [vmem:[#allocation6 + $0x18] sm:$0xff]  ;;  %v304_v57 = vshrl.u32 %v303_v56, 7 }
  0x40   :  { %546 = vmatpush3.msra.mxu0 %v92_v1  ;;  %553 = vmatpush3.msra.mxu1 %v184_v4  ;;  %v179_v9 = vld [vmem:[#allocation6 + $0x10] sm:$0xff]  ;;  %v178_v10 = vld [vmem:[#allocation6 + $0x8] sm:$0xff]  ;;  %v177_v11 = vld [vmem:[#allocation6] sm:$0xff] }
  0x41   :  { %547 = vmatprep.subr.mxu0 %v713_v0  ;;  %554 = vmatprep.subr.mxu1 %v713_v0  ;;  %v298_v12 = vld [vmem:[#allocation9 + $0xe8] sm:$0xff]  ;;  %v300_v13 = vld [vmem:[#allocation9 + $0xf8] sm:$0xff]  ;;  %v297_v14 = vld [vmem:[#allocation9 + $0xe0] sm:$0xff]  ;;  %v305_v58 = vsub.s32 0, %v304_v57  ;;  %v313_v59 = vsub.s32 2, %v304_v57  ;;  %v309_v63 = vsub.s32 1, %v304_v57 }
  0x42   :  { %548 = vmatpush3.msra.mxu0 %v91_v2  ;;  %555 = vmatpush3.msra.mxu1 %v183_v5  ;;  %v294_v15 = vld [vmem:[#allocation9 + $0xc8] sm:$0xff]  ;;  %v293_v16 = vld [vmem:[#allocation9 + $0xc0] sm:$0xff]  ;;  %v299_v28 = vld [vmem:[#allocation9 + $0xf0] sm:$0xff] }
  0x43   :  { %550 = vmatmul.mubr.msk.f32.vlgmr.msra.gmra.mxu0 %vm100_vm1, %v90_v3  ;;  %556 = vmatprep.subr.mxu1 %v713_v0  ;;  %v290_v17 = vld [vmem:[#allocation9 + $0xa8] sm:$0xff]  ;;  %v289_v18 = vld [vmem:[#allocation9 + $0xa0] sm:$0xff]  ;;  %v296_v30 = vld [vmem:[#allocation9 + $0xd8] sm:$0xff] }
  0x44   :  { %390 = vmatprep.mubr.f32.mxu0 %v713_v0  ;;  %557 = vmatpush3.msra.mxu1 %v182_v6  ;;  %v286_v19 = vld [vmem:[#allocation9 + $0x88] sm:$0xff]  ;;  %v285_v20 = vld [vmem:[#allocation9 + $0x80] sm:$0xff]  ;;  %v295_v31 = vld [vmem:[#allocation9 + $0xd0] sm:$0xff] }
  0x45   :  { %558 = vmatprep.subr.mxu1 %v713_v0  ;;  %342 = vmatprep.subr.mxu0 %v298_v12  ;;  %v282_v21 = vld [vmem:[#allocation9 + $0x68] sm:$0xff]  ;;  %v281_v22 = vld [vmem:[#allocation9 + $0x60] sm:$0xff]  ;;  %v292_v32 = vld [vmem:[#allocation9 + $0xb8] sm:$0xff] }
  0x46   :  { %559 = vmatpush3.msra.mxu1 %v181_v7  ;;  %343 = vmatpush1.msra.mxu0 %v297_v14  ;;  %v527_v23 = vld [vmem:[%s813_s2] ss:$0 sm:$0xff]  ;;  %v291_v33 = vld [vmem:[#allocation9 + $0xb0] sm:$0xff]  ;;  %v288_v34 = vld [vmem:[#allocation9 + $0x98] sm:$0xff] }
  0x47   :  { %560 = vmatprep.subr.mxu1 %v713_v0  ;;  %344 = vmatprep.subr.mxu0 %v294_v15  ;;  %v287_v35 = vld [vmem:[#allocation9 + $0x90] sm:$0xff]  ;;  %v284_v36 = vld [vmem:[#allocation9 + $0x78] sm:$0xff]  ;;  %v278_v38 = vld [vmem:[#allocation9 + $0x48] sm:$0xff] }
  0x48   :  { %561 = vmatpush3.msra.mxu1 %v180_v8  ;;  %345 = vmatpush1.msra.mxu0 %v293_v16  ;;  %v283_v37 = vld [vmem:[#allocation9 + $0x70] sm:$0xff]  ;;  %v280_v39 = vld [vmem:[#allocation9 + $0x58] sm:$0xff]  ;;  %v277_v40 = vld [vmem:[#allocation9 + $0x40] sm:$0xff] }
  0x49   :  { %562 = vmatprep.subr.mxu1 %v713_v0  ;;  %346 = vmatprep.subr.mxu0 %v290_v17  ;;  %v279_v41 = vld [vmem:[#allocation9 + $0x50] sm:$0xff]  ;;  %v274_v42 = vld [vmem:[#allocation9 + $0x28] sm:$0xff]  ;;  %v276_v43 = vld [vmem:[#allocation9 + $0x38] sm:$0xff] }
  0x4a   :  { %563 = vmatpush3.msra.mxu1 %v179_v9  ;;  %347 = vmatpush1.msra.mxu0 %v289_v18  ;;  %v273_v44 = vld [vmem:[#allocation9 + $0x20] sm:$0xff]  ;;  %v275_v45 = vld [vmem:[#allocation9 + $0x30] sm:$0xff]  ;;  %v270_v46 = vld [vmem:[#allocation9 + $0x8] sm:$0xff] }
  0x4b   :  { %564 = vmatprep.subr.mxu1 %v713_v0  ;;  %348 = vmatprep.subr.mxu0 %v286_v19  ;;  %v272_v47 = vld [vmem:[#allocation9 + $0x18] sm:$0xff]  ;;  %v269_v48 = vld [vmem:[#allocation9] sm:$0xff]  ;;  %v271_v49 = vld [vmem:[#allocation9 + $0x10] sm:$0xff] }
  0x4c   :  { %565 = vmatpush3.msra.mxu1 %v178_v10  ;;  %349 = vmatpush1.msra.mxu0 %v285_v20  ;;  %v529_v50 = vld [vmem:[#allocation7] ss:$0 sm:$0xff]  ;;  %v301_v60 = vld [vmem:[%s817_s6] sm:$0xf] }
  0x4d   :  { %566 = vmatprep.subr.mxu1 %v713_v0  ;;  %350 = vmatprep.subr.mxu0 %v282_v21  ;;  %v306_v61 = vrot.slane %v301_v60, %v305_v58  ;;  %v314_v62 = vrot.slane %v301_v60, %v313_v59  ;;  %v310_v5 = vrot.slane %v301_v60, %v309_v63 }
  0x4e   :  { %567 = vmatpush3.msra.mxu1 %v177_v11  ;;  %351 = vmatpush1.msra.mxu0 %v281_v22 }
  0x4f   :  { %413 = vmatprep.subr.mxu1 %v300_v13  ;;  %352 = vmatprep.subr.mxu0 %v278_v38 }
  0x50   :  { %353 = vmatpush1.msra.mxu0 %v277_v40 }
  0x51   :  { %354 = vmatprep.subr.mxu0 %v274_v42 }
  0x52   :  { %355 = vmatpush1.msra.mxu0 %v273_v44 }
  0x53   :  { %356 = vmatprep.subr.mxu0 %v270_v46 }
  0x54   :  { %357 = vmatpush1.msra.mxu0 %v269_v48 }
 0x103   :  { %v170_v24 = vpop.f32.mrf.mxu0 }
 0x104   :  { %v171_v25 = vadd.f32 %v527_v23, %v170_v24 }
 0x105   :  { %v551_v26 = vpop.f32.mrf.mxu0 }
 0x106   :  { %vm174_vm2 = vcmp.ge.f32.partialorder %v171_v25, 0.0  ;;  %v175_v27 = vmul.f32 0.01, %v171_v25 }
 0x108   :  { %v176_v29 = vsel %vm174_vm2, %v171_v25, %v175_v27 }
 0x109   :  { %569 = vmatmul.mubr.msk.f32.vlgmr.msra.gmra.mxu1 %vm192_vm3, %v176_v29 }
 0x10a   :  { %414 = vmatpush1.msra.mxu1 %v299_v28  ;;  %461 = vmatprep.mubr.f32.mxu1 %v713_v0  ;;  %v317_v0 = vsub.s32 3, %v304_v57 }
 0x10b   :  { %415 = vmatprep.subr.mxu1 %v296_v30 }
 0x10c   :  { %416 = vmatpush1.msra.mxu1 %v295_v31  ;;  %v318_v6 = vrot.slane %v301_v60, %v317_v0 }
 0x10d   :  { %417 = vmatprep.subr.mxu1 %v292_v32 }
 0x10e   :  { %418 = vmatpush1.msra.mxu1 %v291_v33 }
 0x10f   :  { %419 = vmatprep.subr.mxu1 %v288_v34 }
 0x110   :  { %420 = vmatpush1.msra.mxu1 %v287_v35 }
 0x111   :  { %421 = vmatprep.subr.mxu1 %v284_v36 }
 0x112   :  { %422 = vmatpush1.msra.mxu1 %v283_v37 }
 0x113   :  { %423 = vmatprep.subr.mxu1 %v280_v39 }
 0x114   :  { %424 = vmatpush1.msra.mxu1 %v279_v41 }
 0x115   :  { %425 = vmatprep.subr.mxu1 %v276_v43 }
 0x116   :  { %426 = vmatpush1.msra.mxu1 %v275_v45 }
 0x117   :  { %427 = vmatprep.subr.mxu1 %v272_v47 }
 0x118   :  { %428 = vmatpush1.msra.mxu1 %v271_v49 }
 0x1c9   :  { %v262_v51 = vpop.f32.mrf.mxu1 }
 0x1ca   :  { %v263_v52 = vadd.f32 %v529_v50, %v262_v51 }
 0x1cb   :  { %v570_v53 = vpop.f32.mrf.mxu1 }
 0x1cc   :  { %vm266_vm4 = vcmp.ge.f32.partialorder %v263_v52, 0.0  ;;  %v267_v54 = vmul.f32 0.01, %v263_v52 }
 0x1ce   :  { %v268_v55 = vsel %vm266_vm4, %v263_v52, %v267_v54 }
 0x1cf   :  { %531 = vmatmul.mubr.msk.f32.vlgmr.msra.gmra.mxu0 %vm192_vm3, %v268_v55  ;;  %532 = vmatmul.mubr.msk.f32.vlgmr.msra.gmra.mxu1 %vm192_vm3, %v268_v55 }
 0x28f   :  { %v392_v1 = vpop.f32.mrf.mxu0  ;;  %v463_v2 = vpop.f32.mrf.mxu1 }
 0x290   :  { %v393_v3 = vadd.f32 %v392_v1, %v306_v61  ;;  %v464_v4 = vadd.f32 %v463_v2, %v314_v62 }
 0x291   :  { %v394_v7 = vpop.f32.mrf.mxu0  ;;  %v465_v8 = vpop.f32.mrf.mxu1 }
 0x292   :  { %494 = vmax.xlane.f32.xlu1 %v464_v4  ;;  %468 = vmax.xlane.f32.xlu0 %v393_v3  ;;  %v395_v9 = vadd.f32 %v394_v7, %v310_v5  ;;  %v466_v10 = vadd.f32 %v465_v8, %v318_v6 }
 0x296   :  { %507 = vmax.xlane.f32.xlu1 %v466_v10  ;;  %481 = vmax.xlane.f32.xlu0 %v395_v9 }
 0x31b   :  { %v495_v11 = vpop.xlane.xlu1 %494  ;;  %v469_v12 = vpop.xlane.xlu0 %468 }
 0x31c   :  { %v496_v13 = vsub.f32 %v464_v4, %v495_v11  ;;  %v470_v14 = vsub.f32 %v393_v3, %v469_v12 }
 0x31e   :  { %v471_v15 = vmul.f32 1.442695, %v470_v14  ;;  %v497_v18 = vmul.f32 1.442695, %v496_v13 }
 0x31f   :  { %v508_v16 = vpop.xlane.xlu1 %507  ;;  %v482_v17 = vpop.xlane.xlu0 %481 }
 0x320   :  { %v483_v19 = vsub.f32 %v395_v9, %v482_v17  ;;  %582 = vpow2.f32 %v471_v15  ;;  %v509_v20 = vsub.f32 %v466_v10, %v508_v16 }
 0x321   :  { %584 = vpow2.f32 %v497_v18 }
 0x322   :  { %v484_v21 = vmul.f32 1.442695, %v483_v19  ;;  %v510_v22 = vmul.f32 1.442695, %v509_v20 }
 0x324   :  { %586 = vpow2.f32 %v484_v21 }
 0x325   :  { %588 = vpow2.f32 %v510_v22 }
 0x32d   :  { %v583_v23 = vpop.eup %582 }
 0x32e   :  { %473 = vadd.xlane.f32.xlu0 %v583_v23  ;;  %v585_v24 = vpop.eup %584 }
 0x331   :  { %v587_v25 = vpop.eup %586 }
 0x332   :  { %499 = vadd.xlane.f32.xlu0 %v585_v24  ;;  %486 = vadd.xlane.f32.xlu1 %v587_v25  ;;  %v589_v26 = vpop.eup %588 }
 0x336   :  { %512 = vadd.xlane.f32.xlu1 %v589_v26 }
 0x3b7   :  { %v474_v27 = vpop.xlane.xlu0 %473 }
 0x3b8   :  { %590 = vrcp.f32 %v474_v27 }
 0x3bb   :  { %v487_v28 = vpop.xlane.xlu1 %486  ;;  %v500_v29 = vpop.xlane.xlu0 %499 }
 0x3bc   :  { %592 = vrcp.f32 %v487_v28 }
 0x3bd   :  { %594 = vrcp.f32 %v500_v29 }
 0x3bf   :  { %v513_v30 = vpop.xlane.xlu1 %512 }
 0x3c0   :  { %596 = vrcp.f32 %v513_v30 }
 0x3c5   :  { %v591_v31 = vpop.eup %590 }
 0x3c6   :  { %v476_v32 = vmul.f32 %v591_v31, %v474_v27 }
 0x3c8   :  { %v477_v33 = vsub.f32 2.0, %v476_v32 }
 0x3c9   :  { %v593_v34 = vpop.eup %592 }
 0x3ca   :  { %v595_v35 = vpop.eup %594  ;;  %v478_v36 = vmul.f32 %v591_v31, %v477_v33  ;;  %v489_v37 = vmul.f32 %v593_v34, %v487_v28 }
 0x3cb   :  { %v502_v38 = vmul.f32 %v595_v35, %v500_v29 }
 0x3cc   :  { %v479_v39 = vmul.f32 %v583_v23, %v478_v36  ;;  %v490_v40 = vsub.f32 2.0, %v489_v37 }
 0x3cd   :  { %v597_v41 = vpop.eup %596  ;;  %v503_v42 = vsub.f32 2.0, %v502_v38 }
 0x3ce   :  { %480 = vst [vmem:[%s818_s7] sm:$0xff] %v479_v39  ;;  %v491_v43 = vmul.f32 %v593_v34, %v490_v40  ;;  %v515_v44 = vmul.f32 %v597_v41, %v513_v30 }
 0x3cf   :  { %v504_v45 = vmul.f32 %v595_v35, %v503_v42 }
 0x3d0   :  { %v492_v46 = vmul.f32 %v587_v25, %v491_v43  ;;  %v516_v47 = vsub.f32 2.0, %v515_v44 }
 0x3d1   :  { %v505_v48 = vmul.f32 %v585_v24, %v504_v45 }
 0x3d2   :  { %493 = vst [vmem:[%s818_s7 + $0x8] sm:$0xff] %v492_v46  ;;  %v517_v49 = vmul.f32 %v597_v41, %v516_v47 }
 0x3d3   :  { %506 = vst [vmem:[%s818_s7 + $0x10] sm:$0xff] %v505_v48 }
 0x3d4   :  { %v518_v50 = vmul.f32 %v589_v26, %v517_v49 }
 0x3d6   :  { %519 = vst [vmem:[%s818_s7 + $0x18] sm:$0xff] %v518_v50 }
 0x3d7   :  { %524 = vsyncpa [#allocation3], 1 }
 0x3d8   :  { %525 = vsyncpa [#allocation5], 1 }
 0x3d9   :  { %526 = vsyncpa [#allocation8], 1 }

</bundles_post_ra>
